<compile_context>
chip_gen: v6e
topology: v6e:2x2x1
jax: 0.10.0
libtpu: 0.0.40
codegen_flags: <defaults>
</compile_context>

<pallas_src>
import math

import jax
import jax.numpy as jnp
from jax import lax
from jax.experimental import pallas as pl
from jax.experimental.pallas import tpu as pltpu


LN_EPS = 1e-5  # nn.LayerNorm default


def to_rgb_kernel(x_ref, w_ref, b_ref, o_ref):
    """Fused LayerNorm(stats only) + folded Linear(d_model->3) + sigmoid.

    x_ref: (TM, D)   input rows
    w_ref: (D, 3)    folded weight  = gamma[:, None] * W^T
    b_ref: (1, 3)    folded bias    = beta @ W^T + b
    o_ref: (TM, 3)   output
    """
    x = x_ref[...].astype(jnp.float32)
    d = x.shape[-1]
    inv_d = jnp.float32(1.0 / d)

    # --- LayerNorm statistics, single pass (biased variance, like PyTorch) ---
    s1 = jnp.sum(x, axis=-1, keepdims=True)
    s2 = jnp.sum(x * x, axis=-1, keepdims=True)
    mean = s1 * inv_d
    var = jnp.maximum(s2 * inv_d - mean * mean, 0.0)  # guard f32 cancellation
    inv = lax.rsqrt(var + LN_EPS)
    xn = (x - mean) * inv  # gamma/beta are folded into w_ref/b_ref

    # --- Linear: (TM, D) @ (D, 3) + bias — MXU; extended slot otherwise idle ---
    y = jnp.dot(xn, w_ref[...].astype(jnp.float32),
                preferred_element_type=jnp.float32)
    y = y + b_ref[...].astype(jnp.float32)

    # --- sigmoid (EUP) ---
    o_ref[...] = jax.nn.sigmoid(y).astype(o_ref.dtype)


def _round_up(a, b):
    return ((a + b - 1) // b) * b


def _sublane_multiple(dtype):
    """Packed-sublane multiple: 8 for f32, 16 for bf16, 32 for int8/fp8."""
    itemsize = jnp.dtype(dtype).itemsize
    return max(8, 32 // max(itemsize, 1))


def _choose_block_rows(rows, d_model, dtype):
    """Largest row tile whose *f32-aware* VMEM footprint stays small, while
    leaving >= 8 grid steps (>= 4 per v7x TensorCore) when rows allow."""
    itemsize = jnp.dtype(dtype).itemsize
    sub = _sublane_multiple(dtype)
    d_pad = _round_up(d_model, 128)  # VMEM/vregs pad the lane dim to 128

    # Per-row bytes: double-buffered input tile + ~3 f32 (TM, D) temporaries.
    bytes_per_row = 2 * d_pad * itemsize + 3 * d_pad * 4
    budget = 12 << 20  # ~12 MiB for the row-tile footprint (fits every gen)
    br = budget // bytes_per_row
    br = max(sub, min(1024, br))
    br = (br // sub) * sub

    # Keep >= 8 grid steps when rows are large enough; otherwise one tile.
    if rows >= 8 * sub:
        cap = _round_up((rows + 7) // 8, sub)
    else:
        cap = _round_up(max(rows, 1), sub)
    return max(sub, min(br, cap))


def _vmem_limit_bytes(block_rows, d_model, dtype):
    """Scoped-VMEM limit derived from the true footprint, with headroom."""
    itemsize = jnp.dtype(dtype).itemsize
    d_pad = _round_up(d_model, 128)
    footprint = 2 * block_rows * d_pad * itemsize       # double-buffered input
    footprint += 3 * block_rows * d_pad * 4              # f32 x / x*x / xn temps
    footprint += 2 * block_rows * 128 * itemsize         # output (lane-padded), dbl-buf
    footprint += 2 * (d_pad + 1) * 128 * 4               # folded weight + bias
    limit = _round_up(int(footprint * 1.5) + (1 << 20), 1 << 20)
    return int(min(32 << 20, max(8 << 20, limit)))


def model_to_rgb(x, gamma, beta, weight, bias, *, block_rows=None):
    """Apply ModelToRGB to x of shape (..., d_model).

    weight: PyTorch-convention (3, d_model); bias: (3,). gamma/beta: (d_model,).
    """
    d_model = x.shape[-1]
    lead_shape = x.shape[:-1]
    rows = math.prod(lead_shape) if lead_shape else 1

    if block_rows is None:
        block_rows = _choose_block_rows(rows, d_model, x.dtype)

    # Fold the LayerNorm affine into the Linear (computed once, in f32):
    #   ((x-mean)*inv * gamma + beta) @ W^T + b
    #     = (x-mean)*inv @ (gamma[:, None] * W^T) + (beta @ W^T + b)
    w32 = weight.astype(jnp.float32)
    w_folded = gamma.astype(jnp.float32)[:, None] * w32.T               # (D, 3)
    b_folded = (beta.astype(jnp.float32) @ w32.T
                + bias.astype(jnp.float32)).reshape(1, 3)               # (1, 3)

    x2d = x.reshape(rows, d_model)

    # Pad rows to a multiple of the tile (layout plumbing only; padded rows are
    # computed and dropped — LN of a zero row is finite, no NaNs).
    padded_rows = _round_up(rows, block_rows)
    if padded_rows != rows:
        x2d = jnp.pad(x2d, ((0, padded_rows - rows), (0, 0)))

    grid = (padded_rows // block_rows,)
    vmem_limit = _vmem_limit_bytes(block_rows, d_model, x.dtype)

    out2d = pl.pallas_call(
        to_rgb_kernel,
        out_shape=jax.ShapeDtypeStruct((padded_rows, 3), x.dtype),
        grid_spec=pltpu.PrefetchScalarGridSpec(
            num_scalar_prefetch=0,
            grid=grid,
            in_specs=[
                pl.BlockSpec((block_rows, d_model), lambda i: (i, 0)),  # x tile
                pl.BlockSpec((d_model, 3), lambda i: (0, 0)),           # folded W
                pl.BlockSpec((1, 3), lambda i: (0, 0)),                 # folded b
            ],
            out_specs=pl.BlockSpec((block_rows, 3), lambda i: (i, 0)),
        ),
        compiler_params=pltpu.CompilerParams(
            dimension_semantics=("parallel",),
            vmem_limit_bytes=vmem_limit,
        ),
    )(x2d, w_folded, b_folded)

    if padded_rows != rows:
        out2d = out2d[:rows]
    return out2d.reshape(*lead_shape, 3)


def reference(x, gamma, beta, weight, bias):
    """Pure-JAX reference of the PyTorch forward (two-pass LayerNorm)."""
    xf = x.astype(jnp.float32)
    mean = jnp.mean(xf, axis=-1, keepdims=True)
    var = jnp.mean((xf - mean) ** 2, axis=-1, keepdims=True)
    xn = (xf - mean) / jnp.sqrt(var + LN_EPS)
    xn = xn * gamma + beta
    y = xn @ weight.T + bias
    return jax.nn.sigmoid(y).astype(x.dtype)


if __name__ == "__main__":
    d_model = 32
    batch, seq = 2, 8

    key = jax.random.PRNGKey(0)
    kx, kw, kb = jax.random.split(key, 3)

    # Input: (batch, seq, d_model)
    x = jax.random.normal(kx, (batch, seq, d_model), dtype=jnp.float32)

    # Deterministic parameter init mirroring PyTorch defaults:
    #   LayerNorm: gamma=1, beta=0
    #   Linear:    uniform(-1/sqrt(d_model), 1/sqrt(d_model)) for weight & bias
    gamma = jnp.ones((d_model,), jnp.float32)
    beta = jnp.zeros((d_model,), jnp.float32)
    bound = 1.0 / (d_model ** 0.5)
    weight = jax.random.uniform(kw, (3, d_model), jnp.float32, -bound, bound)
    bias = jax.random.uniform(kb, (3,), jnp.float32, -bound, bound)

    out = jax.block_until_ready(model_to_rgb(x, gamma, beta, weight, bias))
    ref = reference(x, gamma, beta, weight, bias)
    assert out.shape == (batch, seq, 3), out.shape
    assert jnp.allclose(out, ref, atol=1e-5, rtol=1e-5), \
        f"max err {jnp.max(jnp.abs(out - ref))}"

    # Row-padding path (rows not divisible by the tile) + non-trivial gamma/beta
    # so the folded-affine path is actually exercised.
    gamma2 = 1.0 + 0.1 * jax.random.normal(kw, (d_model,), jnp.float32)
    beta2 = 0.1 * jax.random.normal(kb, (d_model,), jnp.float32)
    x_odd = jax.random.normal(kx, (3, 5, d_model), dtype=jnp.float32)
    out_odd = jax.block_until_ready(model_to_rgb(x_odd, gamma2, beta2, weight, bias))
    ref_odd = reference(x_odd, gamma2, beta2, weight, bias)
    assert out_odd.shape == (3, 5, 3), out_odd.shape
    assert jnp.allclose(out_odd, ref_odd, atol=1e-5, rtol=1e-5), \
        f"max err {jnp.max(jnp.abs(out_odd - ref_odd))}"

    # Larger row count: exercises multi-step parallel grid + tile-cap logic.
    x_big = jax.random.normal(kx, (4, 200, d_model), dtype=jnp.float32)
    out_big = jax.block_until_ready(model_to_rgb(x_big, gamma2, beta2, weight, bias))
    ref_big = reference(x_big, gamma2, beta2, weight, bias)
    assert out_big.shape == (4, 200, 3), out_big.shape
    assert jnp.allclose(out_big, ref_big, atol=1e-5, rtol=1e-5), \
        f"max err {jnp.max(jnp.abs(out_big - ref_big))}"

    # Offset-heavy input: checks the single-pass variance against two-pass LN.
    x_off = x + 2.0
    out_off = jax.block_until_ready(model_to_rgb(x_off, gamma2, beta2, weight, bias))
    ref_off = reference(x_off, gamma2, beta2, weight, bias)
    assert jnp.allclose(out_off, ref_off, atol=1e-4, rtol=1e-4), \
        f"max err {jnp.max(jnp.abs(out_off - ref_off))}"

    print("KERNEL_OK")
</pallas_src>

<mosaic_0001>
module attributes {stable_mosaic.version = 11 : i64} {
  func.func @to_rgb_kernel(%arg0: i32, %arg1: memref<16x32xf32, #tpu.memory_space<vmem>>, %arg2: memref<32x3xf32, #tpu.memory_space<vmem>>, %arg3: memref<1x3xf32, #tpu.memory_space<vmem>>, %arg4: memref<16x3xf32, #tpu.memory_space<vmem>>) attributes {dimension_semantics = [#tpu.dimension_semantics<parallel>], iteration_bounds = array<i64: 1>, scalar_prefetch = 0 : i64, scratch_operands = 0 : i64, tpu.core_type = #tpu.core_type<tc>, window_params = [{transform_indices = @transform_0, window_bounds = array<i64: 16, 32>}, {pipeline_mode = #tpu.pipeline_mode<synchronous>, transform_indices = @transform_1, window_bounds = array<i64: 32, 3>}, {pipeline_mode = #tpu.pipeline_mode<synchronous>, transform_indices = @transform_2, window_bounds = array<i64: 1, 3>}, {transform_indices = @transform_3, window_bounds = array<i64: 16, 3>}]} {
    %c0 = arith.constant 0 : index
    %c0_0 = arith.constant 0 : index
    %0 = vector.load %arg1[%c0, %c0_0] : memref<16x32xf32, #tpu.memory_space<vmem>>, vector<16x32xf32>
    %cst = arith.constant dense<0.000000e+00> : vector<16xf32>
    %1 = vector.multi_reduction <add>, %0, %cst [1] : vector<16x32xf32> to vector<16xf32>
    %2 = vector.shape_cast %1 : vector<16xf32> to vector<16x1xf32>
    %3 = arith.mulf %0, %0 : vector<16x32xf32>
    %cst_1 = arith.constant dense<0.000000e+00> : vector<16xf32>
    %4 = vector.multi_reduction <add>, %3, %cst_1 [1] : vector<16x32xf32> to vector<16xf32>
    %5 = vector.shape_cast %4 : vector<16xf32> to vector<16x1xf32>
    %cst_2 = arith.constant 3.125000e-02 : f32
    %6 = vector.broadcast %cst_2 : f32 to vector<16x1xf32>
    %7 = arith.mulf %2, %6 : vector<16x1xf32>
    %cst_3 = arith.constant 3.125000e-02 : f32
    %8 = vector.broadcast %cst_3 : f32 to vector<16x1xf32>
    %9 = arith.mulf %5, %8 : vector<16x1xf32>
    %10 = arith.mulf %7, %7 : vector<16x1xf32>
    %11 = arith.subf %9, %10 : vector<16x1xf32>
    %cst_4 = arith.constant 0.000000e+00 : f32
    %12 = vector.broadcast %cst_4 : f32 to vector<16x1xf32>
    %13 = arith.maximumf %11, %12 : vector<16x1xf32>
    %cst_5 = arith.constant 9.99999974E-6 : f32
    %14 = vector.broadcast %cst_5 : f32 to vector<16x1xf32>
    %15 = arith.addf %13, %14 : vector<16x1xf32>
    %16 = math.rsqrt %15 : vector<16x1xf32>
    %17 = vector.broadcast %7 : vector<16x1xf32> to vector<16x32xf32>
    %18 = arith.subf %0, %17 : vector<16x32xf32>
    %19 = vector.broadcast %16 : vector<16x1xf32> to vector<16x32xf32>
    %20 = arith.mulf %18, %19 : vector<16x32xf32>
    %c0_6 = arith.constant 0 : index
    %c0_7 = arith.constant 0 : index
    %21 = vector.load %arg2[%c0_6, %c0_7] : memref<32x3xf32, #tpu.memory_space<vmem>>, vector<32x3xf32>
    %cst_8 = arith.constant dense<0.000000e+00> : vector<16x3xf32>
    %22 = tpu.matmul %20, %21, %cst_8 {dimension_numbers = #tpu.dot_dimension_numbers<[1], [0], [0], [1], [0, 0, 1, 1], [], []>} : vector<16x32xf32>, vector<32x3xf32>, vector<16x3xf32> -> vector<16x3xf32>
    %c0_9 = arith.constant 0 : index
    %c0_10 = arith.constant 0 : index
    %23 = vector.load %arg3[%c0_9, %c0_10] : memref<1x3xf32, #tpu.memory_space<vmem>>, vector<1x3xf32>
    %24 = vector.broadcast %23 : vector<1x3xf32> to vector<16x3xf32>
    %25 = arith.addf %22, %24 : vector<16x3xf32>
    %26 = arith.negf %25 : vector<16x3xf32>
    %27 = math.exp %26 : vector<16x3xf32>
    %cst_11 = arith.constant 1.000000e+00 : f32
    %28 = vector.broadcast %cst_11 : f32 to vector<16x3xf32>
    %29 = arith.addf %28, %27 : vector<16x3xf32>
    %30 = arith.divf %28, %29 : vector<16x3xf32>
    %c0_12 = arith.constant 0 : index
    %c0_13 = arith.constant 0 : index
    %31 = vector.load %arg4[%c0_12, %c0_13] : memref<16x3xf32, #tpu.memory_space<vmem>>, vector<16x3xf32>
    tpu.vector_store %arg4[%c0_12, %c0_13], %30 {strides = array<i32>} : memref<16x3xf32, #tpu.memory_space<vmem>>, vector<16x3xf32>,
    return
  }
  func.func @transform_0(%arg0: i32) -> (i32, i32) {
    %c0_i32 = arith.constant 0 : i32
    %c0_i32_0 = arith.constant 0 : i32
    return %arg0, %c0_i32 : i32, i32
  }
  func.func @transform_1(%arg0: i32) -> (i32, i32) {
    %c0_i32 = arith.constant 0 : i32
    %c0_i32_0 = arith.constant 0 : i32
    %c0_i32_1 = arith.constant 0 : i32
    return %c0_i32, %c0_i32_0 : i32, i32
  }
  func.func @transform_2(%arg0: i32) -> (i32, i32) {
    %c0_i32 = arith.constant 0 : i32
    %c0_i32_0 = arith.constant 0 : i32
    %c0_i32_1 = arith.constant 0 : i32
    return %c0_i32, %c0_i32_0 : i32, i32
  }
  func.func @transform_3(%arg0: i32) -> (i32, i32) {
    %c0_i32 = arith.constant 0 : i32
    %c0_i32_0 = arith.constant 0 : i32
    return %arg0, %c0_i32 : i32, i32
  }
}

</mosaic_0001>

<bundles_post_ra>
// kernel: tpu_custom_call.1
= control target key start
LH: loop header
LB: loop body
LE: loop exit
PB: predicated region body
PF: predicated region fallthrough
CT: control target
= control target key end

     0   :  { %vm16_vm0 = vcmask 261120   ;;  %vm153_vm1 = vcmask 23552   ;;  %s247_s0 = inlined_call_operand.vmem [shape: f32[16,32], index: 0, kind: input, shape index: {}]   ;;  %s248_s1 = inlined_call_operand.vmem [shape: f32[32,3], index: 1, kind: input, shape index: {}]   ;;  %s249_s2 = inlined_call_operand.vmem [shape: f32[1,3], index: 2, kind: input, shape index: {}]   ;;  %s250_s3 = inlined_call_operand.vmem [shape: f32[16,3], index: 3, kind: output, shape index: {}]  }
   0x1   :  { %v14_v0 = vld [vmem:[%s247_s0] sm:$0xff]  ;;  %v15_v1 = vld [vmem:[%s247_s0 + $0x8] sm:$0xff]  ;;  %v52_v8 = vld [vmem:[%s248_s1 + $0x18] sm:$0xff] }
   0x2   :  { %v17_v2 = vsel %vm16_vm0, %v14_v0, 0.0  ;;  %v23_v3 = vmul.f32 %v14_v0, %v14_v0  ;;  %v24_v4 = vmul.f32 %v15_v1, %v15_v1  ;;  %v20_v6 = vsel %vm16_vm0, %v15_v1, 0.0  ;;  %v51_v9 = vld [vmem:[%s248_s1 + $0x10] sm:$0xff]  ;;  %171 = vmatprep.subr.mxu0 %v52_v8  ;;  %v50_v10 = vld [vmem:[%s248_s1 + $0x8] sm:$0xff]  ;;  %v49_v11 = vld [vmem:[%s248_s1] sm:$0xff] }
   0x3   :  { %18 = vadd.xlane.f32.xlu0 %v17_v2  ;;  %172 = vmatpush3.msra.mxu0 %v52_v8  ;;  %v160_v34 = vld [vmem:[%s249_s2] ss:$0 sm:$0xff] }
   0x4   :  { %v25_v5 = vsel %vm16_vm0, %v23_v3, 0.0  ;;  %v28_v7 = vsel %vm16_vm0, %v24_v4, 0.0  ;;  %173 = vmatprep.subr.mxu0 %v51_v9 }
   0x5   :  { %26 = vadd.xlane.f32.xlu1 %v25_v5  ;;  %174 = vmatpush3.msra.mxu0 %v51_v9 }
   0x6   :  { %175 = vmatprep.subr.mxu0 %v50_v10 }
   0x7   :  { %21 = vadd.xlane.f32.xlu0 %v20_v6  ;;  %176 = vmatpush3.msra.mxu0 %v50_v10 }
   0x8   :  { %177 = vmatprep.subr.mxu0 %v49_v11 }
   0x9   :  { %29 = vadd.xlane.f32.xlu1 %v28_v7  ;;  %178 = vmatpush3.msra.mxu0 %v49_v11 }
  0x8c   :  { %v19_v12 = vpop.xlane.xlu0 %18 }
  0x8d   :  { %v31_v13 = vmul.f32 0.03125, %v19_v12 }
  0x8e   :  { %v27_v14 = vpop.xlane.xlu1 %26 }
  0x8f   :  { %v35_v15 = vmul.f32 %v31_v13, %v31_v13  ;;  %v33_v16 = vmul.f32 0.03125, %v27_v14  ;;  %v45_v28 = vsub.f32 %v14_v0, %v31_v13 }
  0x90   :  { %v22_v17 = vpop.xlane.xlu0 %21 }
  0x91   :  { %v37_v18 = vsub.f32 %v33_v16, %v35_v15  ;;  %v32_v19 = vmul.f32 0.03125, %v22_v17 }
  0x92   :  { %v30_v20 = vpop.xlane.xlu1 %29 }
  0x93   :  { %v39_v21 = vmax.f32 %v37_v18, 0.0  ;;  %v36_v22 = vmul.f32 %v32_v19, %v32_v19  ;;  %v34_v23 = vmul.f32 0.03125, %v30_v20  ;;  %v46_v31 = vsub.f32 %v15_v1, %v32_v19 }
  0x95   :  { %v41_v24 = vadd.f32 1e-05, %v39_v21  ;;  %v38_v25 = vsub.f32 %v34_v23, %v36_v22 }
  0x97   :  { %182 = vrsqrt.f32 %v41_v24  ;;  %v40_v26 = vmax.f32 %v38_v25, 0.0 }
  0x99   :  { %v42_v27 = vadd.f32 1e-05, %v40_v26 }
  0x9b   :  { %184 = vrsqrt.f32 %v42_v27 }
  0xa4   :  { %v183_v29 = vpop.eup %182 }
  0xa5   :  { %v47_v30 = vmul.f32 %v183_v29, %v45_v28 }
  0xa7   :  { %179 = vmatprep.mubr.msk.f32.mxu0 %vm16_vm0, %v47_v30 }
  0xa8   :  { %v185_v32 = vpop.eup %184 }
  0xa9   :  { %v48_v33 = vmul.f32 %v185_v32, %v46_v31 }
  0xab   :  { %180 = vmatmul.mubr.msk.f32.vlgmr.msra.gmra.mxu0 %vm16_vm0, %v48_v33 }
 0x16b   :  { %v181_v35 = vpop.f32.mrf.mxu0 }
 0x16c   :  { %v138_v36 = vadd.f32 %v181_v35, %v160_v34 }
 0x16d   :  { %v132_v37 = vpop.f32.mrf.mxu0 }
 0x16e   :  { %v164_v38 = vmul.f32 -1.442695, %v138_v36  ;;  %v133_v39 = vadd.f32 %v160_v34, %v132_v37 }
 0x170   :  { %186 = vpow2.f32 %v164_v38  ;;  %v163_v40 = vmul.f32 -1.442695, %v133_v39 }
 0x172   :  { %188 = vpow2.f32 %v163_v40 }
 0x17d   :  { %v187_v41 = vpop.eup %186 }
 0x17e   :  { %v148_v42 = vadd.f32 1.0, %v187_v41 }
 0x17f   :  { %v189_v43 = vpop.eup %188 }
 0x180   :  { %190 = vrcp.f32 %v148_v42  ;;  %v147_v44 = vadd.f32 1.0, %v189_v43 }
 0x182   :  { %192 = vrcp.f32 %v147_v44 }
 0x18d   :  { %v191_v45 = vpop.eup %190 }
 0x18e   :  { %155 = vst.msk [vmem:[%s250_s3 + $0x8] sm:$0xff] %vm153_vm1, %v191_v45 }
 0x18f   :  { %v193_v46 = vpop.eup %192 }
 0x190   :  { %154 = vst.msk [vmem:[%s250_s3] sm:$0xff] %vm153_vm1, %v193_v46 }

</bundles_post_ra>
